<compile_context>
chip_gen: v7x
topology: tpu7x:2x2x1
jax: 0.10.0
libtpu: 0.0.40
codegen_flags: <defaults>
</compile_context>

<pallas_src>
import functools

import jax
import jax.numpy as jnp
from jax.experimental import pallas as pl
from jax.experimental.pallas import tpu as pltpu


# ----------------------------------------------------------------------------- helpers
def _round_up(x: int, m: int) -> int:
    return ((x + m - 1) // m) * m


def _apply_activation(y, activation: str):
    if activation == "identity":
        return y
    if activation == "relu":
        return jnp.maximum(y, 0.0)
    if activation == "swish":
        return y * jax.nn.sigmoid(y)
    raise ValueError(f"unknown activation {activation!r}")


def _vmem_capacity_bytes() -> int:
    try:
        return int(pltpu.get_tpu_info().vmem_capacity_bytes)
    except Exception:
        return 64 * 1024 * 1024  # conservative (v7x per-TensorCore)


# ----------------------------------------------------------------------------- kernel
def _fused_mlp_kernel(*refs, num_layers: int, activation: str):
    """Fused stack: o = act(... act(act(x@W0+b0) @ W1 + b1) ...).

    refs = (x_ref, w0_ref, b0_ref, w1_ref, b1_ref, ..., o_ref)
      x_ref : [tm, Fin0]       f32  VMEM (batch tile; cast to bf16 in-kernel)
      wL_ref: [FinL, FoutL]    bf16 VMEM (grid-invariant, single-buffered)
      bL_ref: [1, FoutL]       f32  VMEM
      o_ref : [tm, Fout_last]  f32/bf16 VMEM
    """
    x_ref = refs[0]
    o_ref = refs[-1]
    params = refs[1:-1]

    # Cast on the VPU (a free slot here); input DMA stays f32 -> no wrapper-side cast pass.
    h = x_ref[...].astype(jnp.bfloat16)
    for layer in range(num_layers):
        w = params[2 * layer][...]                                   # bf16
        b = params[2 * layer + 1][...]                               # f32
        y = jnp.dot(h, w, preferred_element_type=jnp.float32) + b    # MXU, f32 accum
        y = _apply_activation(y, activation)                         # f32 on VPU/EUP
        # dropout: identity in eval mode (see TODO at top for training mode).
        if layer + 1 < num_layers:
            h = y.astype(jnp.bfloat16)   # intermediate stays in VMEM/vregs, never touches HBM
        else:
            o_ref[...] = y.astype(o_ref.dtype)


# ----------------------------------------------------------------------------- tiling
def _vmem_estimate_bytes(tm, fin0, fout_dims, param_bytes, param_buffers, out_itemsize):
    in_tile = 2 * tm * fin0 * 4                      # double-buffered f32 input tile
    out_tile = 2 * tm * fout_dims[-1] * out_itemsize  # double-buffered output tile
    inter = tm * sum(fout_dims) * (4 + 2)            # f32 activation + bf16 recast per layer
    return param_buffers * param_bytes + in_tile + out_tile + inter


def _pick_batch_tile(fin0, fout_dims, param_bytes, param_buffers, out_itemsize, budget_bytes):
    tm = 2048
    while tm > 8 and _vmem_estimate_bytes(
            tm, fin0, fout_dims, param_bytes, param_buffers, out_itemsize) > budget_bytes:
        tm //= 2
    return tm


# ----------------------------------------------------------------------------- wrapper
def _forward_impl(x, weights_t, biases, activation, out_dtype, single_buffer_params):
    B, fin0 = x.shape
    num_layers = len(weights_t)
    fin_dims = [int(w.shape[0]) for w in weights_t]
    fout_dims = [int(w.shape[1]) for w in weights_t]
    if fin_dims[0] != fin0:
        raise ValueError("input feature dim mismatch")

    param_bytes = sum(int(w.size) * w.dtype.itemsize for w in weights_t) \
        + sum(int(b.size) * b.dtype.itemsize for b in biases)
    param_buffers = 1 if single_buffer_params else 2
    out_itemsize = jnp.dtype(out_dtype).itemsize

    # ---- generation-aware VMEM budget / batch tile ----
    vmem_cap = _vmem_capacity_bytes()                  # 128 MiB v5e/v6e, 64 MiB v7x (per TC)
    budget = max(16 * 1024 * 1024, int(0.45 * vmem_cap))
    tm = _pick_batch_tile(fin0, fout_dims, param_bytes, param_buffers, out_itemsize, budget)
    tm = min(tm, _round_up(B, 8))                      # never tile bigger than the (8-padded) batch
    if B >= 16:
        # Guarantee >= 2 grid steps so ("parallel",) can shard across v7x's 2 TensorCores.
        tm = min(tm, _round_up(pl.cdiv(B, 2), 8))
    tm = max(tm, 8)
    grid = pl.cdiv(B, tm)                              # partial last block is masked by Pallas

    # ---- specs (weights/biases grid-invariant, single-buffered when supported) ----
    param_kwargs = {"pipeline_mode": pl.Buffered(1)} if single_buffer_params else {}
    in_specs = [pl.BlockSpec((tm, fin0), lambda i: (i, 0))]
    args = [x]                                         # f32; cast to bf16 inside the kernel
    for layer in range(num_layers):
        in_specs.append(pl.BlockSpec((fin_dims[layer], fout_dims[layer]),
                                     lambda i: (0, 0), **param_kwargs))
        in_specs.append(pl.BlockSpec((1, fout_dims[layer]),
                                     lambda i: (0, 0), **param_kwargs))
        args.append(weights_t[layer])
        args.append(biases[layer])
    out_specs = pl.BlockSpec((tm, fout_dims[-1]), lambda i: (i, 0))

    est = _vmem_estimate_bytes(tm, fin0, fout_dims, param_bytes, param_buffers, out_itemsize)
    # Leave headroom for compiler-managed scratch (~40 MiB cap on v7x, ~80 MiB on v5e/v6e).
    vmem_limit = int(min(int(0.625 * vmem_cap), max(16 * 1024 * 1024, 2 * est)))

    flops = 2 * B * sum(fi * fo for fi, fo in zip(fin_dims, fout_dims))
    transcendentals = B * sum(fout_dims) if activation == "swish" else 0
    bytes_accessed = B * fin0 * 4 + param_bytes + B * fout_dims[-1] * out_itemsize

    kernel = functools.partial(
        _fused_mlp_kernel, num_layers=num_layers, activation=activation)

    return pl.pallas_call(
        kernel,
        out_shape=jax.ShapeDtypeStruct((B, fout_dims[-1]), out_dtype),
        grid_spec=pl.GridSpec(
            grid=(grid,),
            in_specs=in_specs,
            out_specs=out_specs,
        ),
        compiler_params=pltpu.CompilerParams(
            dimension_semantics=("parallel",),   # batch tiles are independent (megacore on v7x)
            vmem_limit_bytes=vmem_limit,
        ),
        cost_estimate=pl.CostEstimate(
            flops=flops,
            transcendentals=transcendentals,
            bytes_accessed=bytes_accessed,
        ),
    )(*args)


def state_encoder_forward(x, weights_t, biases, activation, out_dtype=jnp.float32):
    """Run the fused StateEncoder forward pass.

    x         : [B, Fin0] float32
    weights_t : list of [FinL, FoutL] bfloat16 (PyTorch weight transposed, lane-padded)
    biases    : list of [1, FoutL]    float32
    """
    try:
        return _forward_impl(x, weights_t, biases, activation, out_dtype,
                             single_buffer_params=True)
    except Exception:
        # Fallback if this jax version rejects pipeline_mode=pl.Buffered(1) on a
        # pallas_call BlockSpec; identical kernel with default double buffering.
        return _forward_impl(x, weights_t, biases, activation, out_dtype,
                             single_buffer_params=False)


class StateEncoderPallas:
    """JAX/Pallas re-implementation of the PyTorch StateEncoder (eval mode)."""

    def __init__(self, input_size, state_size, num_layers, activation,
                 dropout_rate, output_size=768, *, out_dtype=jnp.float32, key=None):
        if key is None:
            key = jax.random.PRNGKey(0)
        if activation not in ("identity", "relu", "swish"):
            raise ValueError(f"unknown activation {activation!r}")
        if num_layers > 2 and state_size != output_size:
            # The PyTorch module wires layer i>=2 as Linear(state_size, output_size) but feeds
            # it an output_size-wide activation; it only runs when state_size == output_size.
            raise ValueError("num_layers > 2 requires state_size == output_size "
                             "(matches the PyTorch StateEncoder wiring)")
        self.activation = activation
        self.dropout_rate = dropout_rate   # identity in eval mode
        self.out_dtype = out_dtype         # set to jnp.bfloat16 to halve output HBM writes
        self.weights_t = []                # [Fin_pad, Fout_pad] bf16 (MXU operand, lane-dense)
        self.biases = []                   # [1, Fout_pad]       f32
        self._ref_params = []              # original f32 (W [Fout,Fin], b [Fout]) for reference

        # Lane-dense padding: every output width is rounded up to a multiple of 128 with
        # zero weight columns / bias entries; the next layer gets zero weight rows for the
        # padded inputs, so results are bit-identical. Layer-0 K stays unpadded so x itself
        # never needs an HBM pad copy.
        prev_out_pad = input_size
        fout = input_size
        for i in range(num_layers):
            # Matches the PyTorch spec exactly:
            #   layer 0   : nn.Linear(input_size, state_size)
            #   layer i>0 : nn.Linear(state_size, output_size)
            fin = input_size if i == 0 else state_size
            fout = state_size if i == 0 else output_size
            key, kw, kb = jax.random.split(key, 3)
            bound = 1.0 / (fin ** 0.5)     # PyTorch nn.Linear default init
            w = jax.random.uniform(kw, (fout, fin), jnp.float32, -bound, bound)
            b = jax.random.uniform(kb, (fout,), jnp.float32, -bound, bound)
            self._ref_params.append((w, b))

            fin_pad = prev_out_pad
            fout_pad = _round_up(fout, 128)
            w_pad = jnp.zeros((fin_pad, fout_pad), jnp.float32).at[:fin, :fout].set(w.T)
            b_pad = jnp.zeros((1, fout_pad), jnp.float32).at[0, :fout].set(b)
            self.weights_t.append(w_pad.astype(jnp.bfloat16))
            self.biases.append(b_pad)
            prev_out_pad = fout_pad

        self._out_features = fout          # true (unpadded) final width

    def __call__(self, x):
        out = state_encoder_forward(x, self.weights_t, self.biases, self.activation,
                                    out_dtype=self.out_dtype)
        if out.shape[-1] != self._out_features:
            out = out[:, : self._out_features]   # strip final-layer lane padding if any
        return out


# ----------------------------------------------------------------------------- references
def _reference_matched(x, weights_t, biases, activation, out_features):
    """Pure-JAX reference with the same bf16-operand / f32-accumulate recipe."""
    h = x.astype(jnp.bfloat16)
    y = h.astype(jnp.float32)
    for w, b in zip(weights_t, biases):
        y = jnp.dot(h, w, preferred_element_type=jnp.float32) + b
        y = _apply_activation(y, activation)
        h = y.astype(jnp.bfloat16)
    return y[:, :out_features]


def _reference_f32(x, ref_params, activation):
    """Full-precision emulation of the PyTorch module (eval mode)."""
    h = x
    for w, b in ref_params:
        h = _apply_activation(h @ w.T + b, activation)
    return h


if __name__ == "__main__":
    key = jax.random.PRNGKey(0)
    k_in, k_param = jax.random.split(key)

    batch = 8
    input_size = 32
    state_size = 64
    output_size = 128
    num_layers = 2

    enc = StateEncoderPallas(
        input_size=input_size,
        state_size=state_size,
        num_layers=num_layers,
        activation="swish",
        dropout_rate=0.1,
        output_size=output_size,
        key=k_param,
    )

    x = jax.random.normal(k_in, (batch, input_size), jnp.float32)

    out = jax.block_until_ready(enc(x))

    assert out.shape == (batch, output_size), out.shape
    assert out.dtype == jnp.float32, out.dtype

    # bf16 MXU operands with f32 accumulation -> compare against the matched recipe tightly
    # and against the full-f32 PyTorch-semantics reference loosely.
    ref_m = _reference_matched(x, enc.weights_t, enc.biases, "swish", output_size)
    assert jnp.allclose(out, ref_m, atol=2e-2, rtol=2e-2), "mismatch vs matched reference"
    ref_f = _reference_f32(x, enc._ref_params, "swish")
    assert jnp.allclose(out, ref_f, atol=1e-1, rtol=1e-1), "mismatch vs f32 reference"

    print("KERNEL_OK")
</pallas_src>

<mosaic_0001>
module attributes {stable_mosaic.version = 11 : i64} {
  func.func @_fused_mlp_kernel(%arg0: i32, %arg1: memref<8x32xf32, #tpu.memory_space<vmem>>, %arg2: memref<32x128xbf16, #tpu.memory_space<vmem>>, %arg3: memref<1x128xf32, #tpu.memory_space<vmem>>, %arg4: memref<128x128xbf16, #tpu.memory_space<vmem>>, %arg5: memref<1x128xf32, #tpu.memory_space<vmem>>, %arg6: memref<8x128xf32, #tpu.memory_space<vmem>>) attributes {dimension_semantics = [#tpu.dimension_semantics<parallel>], iteration_bounds = array<i64: 1>, scalar_prefetch = 0 : i64, scratch_operands = 0 : i64, tpu.core_type = #tpu.core_type<tc>, window_params = [{transform_indices = @transform_0, window_bounds = array<i64: 8, 32>}, {pipeline_mode = #tpu.pipeline_mode<synchronous>, transform_indices = @transform_1, window_bounds = array<i64: 32, 128>}, {pipeline_mode = #tpu.pipeline_mode<synchronous>, transform_indices = @transform_2, window_bounds = array<i64: 1, 128>}, {pipeline_mode = #tpu.pipeline_mode<synchronous>, transform_indices = @transform_3, window_bounds = array<i64: 128, 128>}, {pipeline_mode = #tpu.pipeline_mode<synchronous>, transform_indices = @transform_4, window_bounds = array<i64: 1, 128>}, {transform_indices = @transform_5, window_bounds = array<i64: 8, 128>}]} {
    %c0 = arith.constant 0 : index
    %c0_0 = arith.constant 0 : index
    %0 = vector.load %arg1[%c0, %c0_0] : memref<8x32xf32, #tpu.memory_space<vmem>>, vector<8x32xf32>
    %1 = arith.truncf %0 : vector<8x32xf32> to vector<8x32xbf16>
    %c0_1 = arith.constant 0 : index
    %c0_2 = arith.constant 0 : index
    %2 = vector.load %arg2[%c0_1, %c0_2] : memref<32x128xbf16, #tpu.memory_space<vmem>>, vector<32x128xbf16>
    %c0_3 = arith.constant 0 : index
    %c0_4 = arith.constant 0 : index
    %3 = vector.load %arg3[%c0_3, %c0_4] : memref<1x128xf32, #tpu.memory_space<vmem>>, vector<1x128xf32>
    %cst = arith.constant dense<0.000000e+00> : vector<8x128xf32>
    %4 = tpu.matmul %1, %2, %cst {dimension_numbers = #tpu.dot_dimension_numbers<[1], [0], [0], [1], [0, 0, 1, 1], [], []>} : vector<8x32xbf16>, vector<32x128xbf16>, vector<8x128xf32> -> vector<8x128xf32>
    %5 = vector.broadcast %3 : vector<1x128xf32> to vector<8x128xf32>
    %6 = arith.addf %4, %5 : vector<8x128xf32>
    %7 = arith.negf %6 : vector<8x128xf32>
    %8 = math.exp %7 : vector<8x128xf32>
    %cst_5 = arith.constant 1.000000e+00 : f32
    %9 = vector.broadcast %cst_5 : f32 to vector<8x128xf32>
    %10 = arith.addf %9, %8 : vector<8x128xf32>
    %11 = arith.divf %9, %10 : vector<8x128xf32>
    %12 = arith.mulf %6, %11 : vector<8x128xf32>
    %13 = arith.truncf %12 : vector<8x128xf32> to vector<8x128xbf16>
    %c0_6 = arith.constant 0 : index
    %c0_7 = arith.constant 0 : index
    %14 = vector.load %arg4[%c0_6, %c0_7] : memref<128x128xbf16, #tpu.memory_space<vmem>>, vector<128x128xbf16>
    %c0_8 = arith.constant 0 : index
    %c0_9 = arith.constant 0 : index
    %15 = vector.load %arg5[%c0_8, %c0_9] : memref<1x128xf32, #tpu.memory_space<vmem>>, vector<1x128xf32>
    %cst_10 = arith.constant dense<0.000000e+00> : vector<8x128xf32>
    %16 = tpu.matmul %13, %14, %cst_10 {dimension_numbers = #tpu.dot_dimension_numbers<[1], [0], [0], [1], [0, 0, 1, 1], [], []>} : vector<8x128xbf16>, vector<128x128xbf16>, vector<8x128xf32> -> vector<8x128xf32>
    %17 = vector.broadcast %15 : vector<1x128xf32> to vector<8x128xf32>
    %18 = arith.addf %16, %17 : vector<8x128xf32>
    %19 = arith.negf %18 : vector<8x128xf32>
    %20 = math.exp %19 : vector<8x128xf32>
    %cst_11 = arith.constant 1.000000e+00 : f32
    %21 = vector.broadcast %cst_11 : f32 to vector<8x128xf32>
    %22 = arith.addf %21, %20 : vector<8x128xf32>
    %23 = arith.divf %21, %22 : vector<8x128xf32>
    %24 = arith.mulf %18, %23 : vector<8x128xf32>
    %c0_12 = arith.constant 0 : index
    %c0_13 = arith.constant 0 : index
    %25 = vector.load %arg6[%c0_12, %c0_13] : memref<8x128xf32, #tpu.memory_space<vmem>>, vector<8x128xf32>
    tpu.vector_store %arg6[%c0_12, %c0_13], %24 {strides = array<i32>} : memref<8x128xf32, #tpu.memory_space<vmem>>, vector<8x128xf32>,
    return
  }
  func.func @transform_0(%arg0: i32) -> (i32, i32) {
    %c0_i32 = arith.constant 0 : i32
    %c0_i32_0 = arith.constant 0 : i32
    return %arg0, %c0_i32 : i32, i32
  }
  func.func @transform_1(%arg0: i32) -> (i32, i32) {
    %c0_i32 = arith.constant 0 : i32
    %c0_i32_0 = arith.constant 0 : i32
    %c0_i32_1 = arith.constant 0 : i32
    return %c0_i32, %c0_i32_0 : i32, i32
  }
  func.func @transform_2(%arg0: i32) -> (i32, i32) {
    %c0_i32 = arith.constant 0 : i32
    %c0_i32_0 = arith.constant 0 : i32
    %c0_i32_1 = arith.constant 0 : i32
    return %c0_i32, %c0_i32_0 : i32, i32
  }
  func.func @transform_3(%arg0: i32) -> (i32, i32) {
    %c0_i32 = arith.constant 0 : i32
    %c0_i32_0 = arith.constant 0 : i32
    %c0_i32_1 = arith.constant 0 : i32
    return %c0_i32, %c0_i32_0 : i32, i32
  }
  func.func @transform_4(%arg0: i32) -> (i32, i32) {
    %c0_i32 = arith.constant 0 : i32
    %c0_i32_0 = arith.constant 0 : i32
    %c0_i32_1 = arith.constant 0 : i32
    return %c0_i32, %c0_i32_0 : i32, i32
  }
  func.func @transform_5(%arg0: i32) -> (i32, i32) {
    %c0_i32 = arith.constant 0 : i32
    %c0_i32_0 = arith.constant 0 : i32
    return %arg0, %c0_i32 : i32, i32
  }
}

module attributes {stable_mosaic.version = 11 : i64} {
  func.func @_fused_mlp_kernel(%arg0: i32, %arg1: memref<8x32xf32, #tpu.memory_space<vmem>>, %arg2: memref<32x128xbf16, #tpu.memory_space<vmem>>, %arg3: memref<1x128xf32, #tpu.memory_space<vmem>>, %arg4: memref<128x128xbf16, #tpu.memory_space<vmem>>, %arg5: memref<1x128xf32, #tpu.memory_space<vmem>>, %arg6: memref<8x128xf32, #tpu.memory_space<vmem>>) attributes {dimension_semantics = [#tpu.dimension_semantics<parallel>], iteration_bounds = array<i64: 1>, scalar_prefetch = 0 : i64, scratch_operands = 0 : i64, tpu.core_type = #tpu.core_type<tc>, window_params = [{transform_indices = @transform_0, window_bounds = array<i64: 8, 32>}, {pipeline_mode = #tpu.pipeline_mode<synchronous>, transform_indices = @transform_1, window_bounds = array<i64: 32, 128>}, {pipeline_mode = #tpu.pipeline_mode<synchronous>, transform_indices = @transform_2, window_bounds = array<i64: 1, 128>}, {pipeline_mode = #tpu.pipeline_mode<synchronous>, transform_indices = @transform_3, window_bounds = array<i64: 128, 128>}, {pipeline_mode = #tpu.pipeline_mode<synchronous>, transform_indices = @transform_4, window_bounds = array<i64: 1, 128>}, {transform_indices = @transform_5, window_bounds = array<i64: 8, 128>}]} {
    %c0 = arith.constant 0 : index
    %c0_0 = arith.constant 0 : index
    %0 = vector.load %arg1[%c0, %c0_0] : memref<8x32xf32, #tpu.memory_space<vmem>>, vector<8x32xf32>
    %1 = arith.truncf %0 : vector<8x32xf32> to vector<8x32xbf16>
    %c0_1 = arith.constant 0 : index
    %c0_2 = arith.constant 0 : index
    %2 = vector.load %arg2[%c0_1, %c0_2] : memref<32x128xbf16, #tpu.memory_space<vmem>>, vector<32x128xbf16>
    %c0_3 = arith.constant 0 : index
    %c0_4 = arith.constant 0 : index
    %3 = vector.load %arg3[%c0_3, %c0_4] : memref<1x128xf32, #tpu.memory_space<vmem>>, vector<1x128xf32>
    %cst = arith.constant dense<0.000000e+00> : vector<8x128xf32>
    %4 = tpu.matmul %1, %2, %cst {dimension_numbers = #tpu.dot_dimension_numbers<[1], [0], [0], [1], [0, 0, 1, 1], [], []>} : vector<8x32xbf16>, vector<32x128xbf16>, vector<8x128xf32> -> vector<8x128xf32>
    %5 = vector.broadcast %3 : vector<1x128xf32> to vector<8x128xf32>
    %6 = arith.addf %4, %5 : vector<8x128xf32>
    %7 = arith.negf %6 : vector<8x128xf32>
    %8 = math.exp %7 : vector<8x128xf32>
    %cst_5 = arith.constant 1.000000e+00 : f32
    %9 = vector.broadcast %cst_5 : f32 to vector<8x128xf32>
    %10 = arith.addf %9, %8 : vector<8x128xf32>
    %11 = arith.divf %9, %10 : vector<8x128xf32>
    %12 = arith.mulf %6, %11 : vector<8x128xf32>
    %13 = arith.truncf %12 : vector<8x128xf32> to vector<8x128xbf16>
    %c0_6 = arith.constant 0 : index
    %c0_7 = arith.constant 0 : index
    %14 = vector.load %arg4[%c0_6, %c0_7] : memref<128x128xbf16, #tpu.memory_space<vmem>>, vector<128x128xbf16>
    %c0_8 = arith.constant 0 : index
    %c0_9 = arith.constant 0 : index
    %15 = vector.load %arg5[%c0_8, %c0_9] : memref<1x128xf32, #tpu.memory_space<vmem>>, vector<1x128xf32>
    %cst_10 = arith.constant dense<0.000000e+00> : vector<8x128xf32>
    %16 = tpu.matmul %13, %14, %cst_10 {dimension_numbers = #tpu.dot_dimension_numbers<[1], [0], [0], [1], [0, 0, 1, 1], [], []>} : vector<8x128xbf16>, vector<128x128xbf16>, vector<8x128xf32> -> vector<8x128xf32>
    %17 = vector.broadcast %15 : vector<1x128xf32> to vector<8x128xf32>
    %18 = arith.addf %16, %17 : vector<8x128xf32>
    %19 = arith.negf %18 : vector<8x128xf32>
    %20 = math.exp %19 : vector<8x128xf32>
    %cst_11 = arith.constant 1.000000e+00 : f32
    %21 = vector.broadcast %cst_11 : f32 to vector<8x128xf32>
    %22 = arith.addf %21, %20 : vector<8x128xf32>
    %23 = arith.divf %21, %22 : vector<8x128xf32>
    %24 = arith.mulf %18, %23 : vector<8x128xf32>
    %c0_12 = arith.constant 0 : index
    %c0_13 = arith.constant 0 : index
    %25 = vector.load %arg6[%c0_12, %c0_13] : memref<8x128xf32, #tpu.memory_space<vmem>>, vector<8x128xf32>
    tpu.vector_store %arg6[%c0_12, %c0_13], %24 {strides = array<i32>} : memref<8x128xf32, #tpu.memory_space<vmem>>, vector<8x128xf32>,
    return
  }
  func.func @transform_0(%arg0: i32) -> (i32, i32) {
    %c0_i32 = arith.constant 0 : i32
    %c0_i32_0 = arith.constant 0 : i32
    return %arg0, %c0_i32 : i32, i32
  }
  func.func @transform_1(%arg0: i32) -> (i32, i32) {
    %c0_i32 = arith.constant 0 : i32
    %c0_i32_0 = arith.constant 0 : i32
    %c0_i32_1 = arith.constant 0 : i32
    return %c0_i32, %c0_i32_0 : i32, i32
  }
  func.func @transform_2(%arg0: i32) -> (i32, i32) {
    %c0_i32 = arith.constant 0 : i32
    %c0_i32_0 = arith.constant 0 : i32
    %c0_i32_1 = arith.constant 0 : i32
    return %c0_i32, %c0_i32_0 : i32, i32
  }
  func.func @transform_3(%arg0: i32) -> (i32, i32) {
    %c0_i32 = arith.constant 0 : i32
    %c0_i32_0 = arith.constant 0 : i32
    %c0_i32_1 = arith.constant 0 : i32
    return %c0_i32, %c0_i32_0 : i32, i32
  }
  func.func @transform_4(%arg0: i32) -> (i32, i32) {
    %c0_i32 = arith.constant 0 : i32
    %c0_i32_0 = arith.constant 0 : i32
    %c0_i32_1 = arith.constant 0 : i32
    return %c0_i32, %c0_i32_0 : i32, i32
  }
  func.func @transform_5(%arg0: i32) -> (i32, i32) {
    %c0_i32 = arith.constant 0 : i32
    %c0_i32_0 = arith.constant 0 : i32
    return %arg0, %c0_i32 : i32, i32
  }
}

</mosaic_0001>

<bundles_post_ra>
// kernel: tpu_custom_call.1
= control target key start
LH: loop header
LB: loop body
LE: loop exit
PB: predicated region body
PF: predicated region fallthrough
CT: control target
= control target key end

     0   :  { %10 = vsyncpa [#allocation3], 0  ;;  %s546_s0 = inlined_call_operand.hbm [shape: f32[8,32], index: 0, kind: input, shape index: {}]   ;;  %s547_s1 = inlined_call_operand.hbm [shape: bf16[32,128], index: 1, kind: input, shape index: {}]   ;;  %s548_s2 = inlined_call_operand.vmem [shape: f32[1,128], index: 2, kind: input, shape index: {}]   ;;  %s549_s3 = inlined_call_operand.hbm [shape: bf16[128,128], index: 3, kind: input, shape index: {}]   ;;  %s550_s4 = inlined_call_operand.vmem [shape: f32[1,128], index: 4, kind: input, shape index: {}]   ;;  %s551_s5 = inlined_call_operand.hbm [shape: f32[8,128], index: 5, kind: output, shape index: {}]  }
   0x1   :  { %11 = vsyncpa [#allocation6], 0 }
   0x2   :  { %12 = vsyncpa [#allocation4], 0  ;;  %s448_s18 = smov [#allocation5]   ;;  %s354_s22 = scalar_lea.hbm %s547_s1, 256 }
   0x3   :  { %s28_s19 = sshll.u32 %s448_s18, 4  ;;  %p355_p0 = scmp.ne.s32.totalorder %s547_s1, %s354_s22  ;;  %s29_s19 = int_to_ptr.vmem [resolvable:$true] %s28_s19 }
   0x4   :  { %p358_p1 = scmp.lt.u32.totalorder %s354_s22, %s547_s1 }
   0x6   :  { %p360_p2 = pnand %p358_p1, %p355_p0 }
   0x8   :  { %363 = shalt.err (!%p360_p2)
}
   0x9   :  { %s364_s27 = scalar_lea.vmem %s29_s19, 256  ;;  %p369_p4 = scmp.lt.s32.totalorder %s29_s19, %s29_s19 }
   0xa   :  { %p365_p3 = scmp.ne.s32.totalorder %s29_s19, %s364_s27  ;;  %p370_p5 = scmp.lt.s32.totalorder %s364_s27, %s364_s27 }
   0xc   :  { %p371_p6 = por %p370_p5, %p369_p4 }
   0xe   :  { %p372_p7 = pnand %p371_p6, %p365_p3 }
  0x10   :  { %375 = shalt.err (!%p372_p7)
}
  0x11   :  { %s449_s28 = smov 64   ;;  %s450_s29 = smov 4  }
  0x12   :  { %34 = dma.hbm_to_vmem [thread:$0]  %s547_s1, 256, %s29_s19, [#allocation6], %s449_s28, %s449_s28, %s450_s29  }
  0x13   :  { %s451_s7 = smov [#allocation2]   ;;  %s452_s9 = smov [#allocation7]  }
  0x14   :  { %s19_s8 = sshll.u32 %s451_s7, 4  ;;  %s42_s10 = sshll.u32 %s452_s9, 4  ;;  %s20_s8 = int_to_ptr.vmem [resolvable:$true] %s19_s8  ;;  %s43_s10 = int_to_ptr.vmem [resolvable:$true] %s42_s10 }
  0x15   :  { %s376_s13 = scalar_lea.hbm %s546_s0, 128 }
  0x16   :  { %p377_p8 = scmp.ne.s32.totalorder %s546_s0, %s376_s13  ;;  %p380_p9 = scmp.lt.u32.totalorder %s376_s13, %s546_s0 }
  0x18   :  { %p382_p10 = pnand %p380_p9, %p377_p8 }
  0x1a   :  { %385 = shalt.err (!%p382_p10)
}
  0x1b   :  { %s386_s1 = scalar_lea.vmem %s20_s8, 128  ;;  %p391_p12 = scmp.lt.s32.totalorder %s20_s8, %s20_s8 }
  0x1c   :  { %p387_p11 = scmp.ne.s32.totalorder %s20_s8, %s386_s1  ;;  %p392_p13 = scmp.lt.s32.totalorder %s386_s1, %s386_s1 }
  0x1e   :  { %p393_p0 = por %p392_p13, %p391_p12 }
  0x20   :  { %p394_p1 = pnand %p393_p0, %p387_p11 }
  0x22   :  { %397 = shalt.err (!%p394_p1)
}
  0x23   :  { %22 = dma.hbm_to_vmem [thread:$0]  %s546_s0, 128, %s20_s8, [#allocation3]  }
  0x24   :  { %s398_s22 = scalar_lea.hbm %s549_s3, 1024 }
  0x25   :  { %p399_p2 = scmp.ne.s32.totalorder %s549_s3, %s398_s22  ;;  %p402_p3 = scmp.lt.u32.totalorder %s398_s22, %s549_s3 }
  0x27   :  { %p404_p4 = pnand %p402_p3, %p399_p2 }
  0x29   :  { %407 = shalt.err (!%p404_p4)
}
  0x2a   :  { %s408_s27 = scalar_lea.vmem %s43_s10, 1024  ;;  %p413_p6 = scmp.lt.s32.totalorder %s43_s10, %s43_s10 }
  0x2b   :  { %p409_p5 = scmp.ne.s32.totalorder %s43_s10, %s408_s27  ;;  %p414_p7 = scmp.lt.s32.totalorder %s408_s27, %s408_s27 }
  0x2d   :  { %p415_p8 = por %p414_p7, %p413_p6 }
  0x2f   :  { %p416_p9 = pnand %p415_p8, %p409_p5 }
  0x31   :  { %419 = shalt.err (!%p416_p9)
}
  0x32   :  { %48 = dma.hbm_to_vmem [thread:$0]  %s549_s3, 1024, %s43_s10, [#allocation6], %s449_s28, %s449_s28, %s450_s29  }
  0x33   :  { %442 = dma.done.wait [#allocation3], 128  }
  0x34   :  { %443 = vsyncadd [#allocation3], 4294967168 }
  0x35   :  { %444 = dma.done.wait [#allocation6], 1280  }
  0x36   :  { %445 = vsyncadd [#allocation6], 4294966016  ;;  %v453_v0 = vmov 0.0   ;;  %vm454_vm0 = vmmov 0   ;;  %v336_v1 = vld [vmem:[#allocation5] sm:$0xff]   ;;  %v337_v2 = vld [vmem:[#allocation5 + $0x8] sm:$0xff]  }
  0x37   :  { %300 = vmatprep.subr.bf16.mxu0 %v453_v0  ;;  %304 = vmatprep.mubr.msk.bf16.mxu0 %vm454_vm0, %v453_v0  ;;  %v61_v3 = vld [vmem:[#allocation2] sm:$0xff]  ;;  %vm86_vm1 = vcmask 261120   ;;  %v338_v5 = vld [vmem:[#allocation7] sm:$0xff]   ;;  %v340_v7 = vld [vmem:[#allocation7 + $0x10] sm:$0xff]  }
  0x38   :  { %308 = vmatprep.subr.bf16.mxu1 %v453_v0  ;;  %324 = vmatprep.mubr.msk.bf16.mxu1 %vm454_vm0, %v453_v0  ;;  %v62_v4 = vpack.c.bf16 %v61_v3, %v61_v3  ;;  %v339_v6 = vld [vmem:[#allocation7 + $0x8] sm:$0xff]   ;;  %v341_v8 = vld [vmem:[#allocation7 + $0x18] sm:$0xff]   ;;  %v342_v9 = vld [vmem:[#allocation7 + $0x20] sm:$0xff]  }
  0x39   :  { %301 = vmatpush3.bf16.msra.mxu0 %v336_v1  ;;  %309 = vmatpush3.bf16.msra.mxu1 %v338_v5  ;;  %v343_v10 = vld [vmem:[#allocation7 + $0x28] sm:$0xff]   ;;  %v344_v11 = vld [vmem:[#allocation7 + $0x30] sm:$0xff]   ;;  %v345_v12 = vld [vmem:[#allocation7 + $0x38] sm:$0xff]  }
  0x3a   :  { %302 = vmatprep.subr.bf16.mxu0 %v453_v0  ;;  %310 = vmatprep.subr.bf16.mxu1 %v453_v0  ;;  %v273_v13 = vld [vmem:[%s548_s2] ss:$0 sm:$0xff]  ;;  %s455_s2 = smov [#allocation8]  }
  0x3b   :  { %v278_v25 = vld [vmem:[%s550_s4] ss:$0 sm:$0xff]  ;;  %s263_s7 = sshll.u32 %s455_s2, 4  ;;  %s264_s7 = int_to_ptr.vmem [resolvable:$true] %s263_s7 }
  0x3c   :  { %s420_s8 = scalar_lea.vmem %s264_s7, 128  ;;  %p425_p11 = scmp.lt.s32.totalorder %s264_s7, %s264_s7 }
  0x3d   :  { %303 = vmatpush3.bf16.msra.mxu0 %v337_v2  ;;  %311 = vmatpush3.bf16.msra.mxu1 %v339_v6  ;;  %p421_p10 = scmp.ne.s32.totalorder %s264_s7, %s420_s8  ;;  %p426_p12 = scmp.lt.s32.totalorder %s420_s8, %s420_s8 }
  0x3e   :  { %312 = vmatprep.subr.bf16.mxu1 %v453_v0 }
  0x3f   :  { %p427_p13 = por %p426_p12, %p425_p11 }
  0x40   :  { %305 = vmatmul.mubr.msk.bf16.vlgmr.msra.gmra.mrb[0].mxu0 %vm86_vm1, %v62_v4 }
  0x41   :  { %313 = vmatpush3.bf16.msra.mxu1 %v340_v7  ;;  %p428_p0 = pnand %p427_p13, %p421_p10 }
  0x42   :  { %314 = vmatprep.subr.bf16.mxu1 %v453_v0 }
  0x45   :  { %315 = vmatpush3.bf16.msra.mxu1 %v341_v8 }
  0x46   :  { %316 = vmatprep.subr.bf16.mxu1 %v453_v0 }
  0x49   :  { %317 = vmatpush3.bf16.msra.mxu1 %v342_v9 }
  0x4a   :  { %318 = vmatprep.subr.bf16.mxu1 %v453_v0 }
  0x4d   :  { %319 = vmatpush3.bf16.msra.mxu1 %v343_v10 }
  0x4e   :  { %320 = vmatprep.subr.bf16.mxu1 %v453_v0 }
  0x51   :  { %321 = vmatpush3.bf16.msra.mxu1 %v344_v11 }
  0x52   :  { %322 = vmatprep.subr.bf16.mxu1 %v453_v0 }
  0x55   :  { %323 = vmatpush3.bf16.msra.mxu1 %v345_v12 }
 0x113   :  { %v124_v14 = vpop.f32.mrb[0].mxu0 }
 0x114   :  { %v125_v15 = vadd.f32 %v273_v13, %v124_v14  ;;  %v306_v16 = vpop.f32.mrb[1].mxu0 }
 0x115   :  { %v127_v17 = vpop.f32.mrb[2].mxu0 }
 0x116   :  { %v277_v18 = vmul.f32 -1.442695, %v125_v15  ;;  %v307_v19 = vpop.f32.mrb[3].mxu0 }
 0x118   :  { %346 = vpow2.f32 %v277_v18 }
 0x122   :  { %v347_v20 = vpop.eup %346 }
 0x123   :  { %v133_v21 = vadd.f32 1.0, %v347_v20 }
 0x125   :  { %348 = vrcp.f32 %v133_v21 }
 0x12f   :  { %v349_v22 = vpop.eup %348 }
 0x130   :  { %v136_v23 = vmul.f32 %v349_v22, %v125_v15 }
 0x132   :  { %v137_v24 = vpack.c.bf16 %v136_v23, %v136_v23 }
 0x134   :  { %325 = vmatmul.mubr.bf16.vlgmr.msra.gmra.mrb[0].mxu1 %v137_v24 }
 0x207   :  { %v243_v26 = vpop.f32.mrb[0].mxu1 }
 0x208   :  { %v244_v27 = vadd.f32 %v278_v25, %v243_v26  ;;  %v326_v28 = vpop.f32.mrb[1].mxu1 }
 0x209   :  { %v246_v29 = vpop.f32.mrb[2].mxu1 }
 0x20a   :  { %v287_v30 = vmul.f32 -1.442695, %v244_v27  ;;  %v327_v31 = vpop.f32.mrb[3].mxu1 }
 0x20c   :  { %350 = vpow2.f32 %v287_v30 }
 0x216   :  { %v351_v32 = vpop.eup %350 }
 0x217   :  { %v252_v33 = vadd.f32 1.0, %v351_v32 }
 0x219   :  { %352 = vrcp.f32 %v252_v33 }
 0x223   :  { %v353_v34 = vpop.eup %352 }
 0x224   :  { %v255_v35 = vmul.f32 %v353_v34, %v244_v27 }
 0x226   :  { %256 = vst [vmem:[#allocation8] sm:$0xff] %v255_v35 }
 0x227   :  { %431 = shalt.err (!%p428_p0)
}
 0x228   :  { %s432_s10 = scalar_lea.hbm %s551_s5, 128 }
 0x229   :  { %p433_p1 = scmp.ne.s32.totalorder %s551_s5, %s432_s10  ;;  %p436_p2 = scmp.lt.u32.totalorder %s432_s10, %s551_s5 }
 0x22b   :  { %p438_p3 = pnand %p436_p2, %p433_p1 }
 0x22d   :  { %441 = shalt.err (!%p438_p3)
}
 0x22e   :  { %266 = dma.vmem_to_hbm [thread:$0]  %s264_s7, 128, %s551_s5, [#allocation4]  }
 0x22f   :  { %446 = dma.done.wait [#allocation4], 128  }
 0x230   :  { %447 = vsyncadd [#allocation4], 4294967168 }
 0x231   :  { %270 = vsyncpa [#allocation3], 1 }
 0x232   :  { %271 = vsyncpa [#allocation6], 1 }
 0x233   :  { %272 = vsyncpa [#allocation4], 1 }

// kernel: tpu_custom_call.1
= control target key start
LH: loop header
LB: loop body
LE: loop exit
PB: predicated region body
PF: predicated region fallthrough
CT: control target
= control target key end

     0   :  { %10 = vsyncpa [#allocation3], 0  ;;  %s546_s0 = inlined_call_operand.hbm [shape: f32[8,32], index: 0, kind: input, shape index: {}]   ;;  %s547_s1 = inlined_call_operand.hbm [shape: bf16[32,128], index: 1, kind: input, shape index: {}]   ;;  %s548_s2 = inlined_call_operand.vmem [shape: f32[1,128], index: 2, kind: input, shape index: {}]   ;;  %s549_s3 = inlined_call_operand.hbm [shape: bf16[128,128], index: 3, kind: input, shape index: {}]   ;;  %s550_s4 = inlined_call_operand.vmem [shape: f32[1,128], index: 4, kind: input, shape index: {}]   ;;  %s551_s5 = inlined_call_operand.hbm [shape: f32[8,128], index: 5, kind: output, shape index: {}]  }
   0x1   :  { %11 = vsyncpa [#allocation6], 0 }
   0x2   :  { %12 = vsyncpa [#allocation4], 0  ;;  %s448_s18 = smov [#allocation5]   ;;  %s354_s22 = scalar_lea.hbm %s547_s1, 256 }
   0x3   :  { %s28_s19 = sshll.u32 %s448_s18, 4  ;;  %p355_p0 = scmp.ne.s32.totalorder %s547_s1, %s354_s22  ;;  %s29_s19 = int_to_ptr.vmem [resolvable:$true] %s28_s19 }
   0x4   :  { %p358_p1 = scmp.lt.u32.totalorder %s354_s22, %s547_s1 }
   0x6   :  { %p360_p2 = pnand %p358_p1, %p355_p0 }
   0x8   :  { %363 = shalt.err (!%p360_p2)
}
   0x9   :  { %s364_s27 = scalar_lea.vmem %s29_s19, 256  ;;  %p369_p4 = scmp.lt.s32.totalorder %s29_s19, %s29_s19 }
   0xa   :  { %p365_p3 = scmp.ne.s32.totalorder %s29_s19, %s364_s27  ;;  %p370_p5 = scmp.lt.s32.totalorder %s364_s27, %s364_s27 }
   0xc   :  { %p371_p6 = por %p370_p5, %p369_p4 }
   0xe   :  { %p372_p7 = pnand %p371_p6, %p365_p3 }
  0x10   :  { %375 = shalt.err (!%p372_p7)
}
  0x11   :  { %s449_s28 = smov 64   ;;  %s450_s29 = smov 4  }
  0x12   :  { %34 = dma.hbm_to_vmem [thread:$0]  %s547_s1, 256, %s29_s19, [#allocation6], %s449_s28, %s449_s28, %s450_s29  }
  0x13   :  { %s451_s7 = smov [#allocation2]   ;;  %s452_s9 = smov [#allocation7]  }
  0x14   :  { %s19_s8 = sshll.u32 %s451_s7, 4  ;;  %s42_s10 = sshll.u32 %s452_s9, 4  ;;  %s20_s8 = int_to_ptr.vmem [resolvable:$true] %s19_s8  ;;  %s43_s10 = int_to_ptr.vmem [resolvable:$true] %s42_s10 }
  0x15   :  { %s376_s13 = scalar_lea.hbm %s546_s0, 128 }
  0x16   :  { %p377_p8 = scmp.ne.s32.totalorder %s546_s0, %s376_s13  ;;  %p380_p9 = scmp.lt.u32.totalorder %s376_s13, %s546_s0 }
  0x18   :  { %p382_p10 = pnand %p380_p9, %p377_p8 }
  0x1a   :  { %385 = shalt.err (!%p382_p10)
}
  0x1b   :  { %s386_s1 = scalar_lea.vmem %s20_s8, 128  ;;  %p391_p12 = scmp.lt.s32.totalorder %s20_s8, %s20_s8 }
  0x1c   :  { %p387_p11 = scmp.ne.s32.totalorder %s20_s8, %s386_s1  ;;  %p392_p13 = scmp.lt.s32.totalorder %s386_s1, %s386_s1 }
  0x1e   :  { %p393_p0 = por %p392_p13, %p391_p12 }
  0x20   :  { %p394_p1 = pnand %p393_p0, %p387_p11 }
  0x22   :  { %397 = shalt.err (!%p394_p1)
}
  0x23   :  { %22 = dma.hbm_to_vmem [thread:$0]  %s546_s0, 128, %s20_s8, [#allocation3]  }
  0x24   :  { %s398_s22 = scalar_lea.hbm %s549_s3, 1024 }
  0x25   :  { %p399_p2 = scmp.ne.s32.totalorder %s549_s3, %s398_s22  ;;  %p402_p3 = scmp.lt.u32.totalorder %s398_s22, %s549_s3 }
  0x27   :  { %p404_p4 = pnand %p402_p3, %p399_p2 }
  0x29   :  { %407 = shalt.err (!%p404_p4)
}
  0x2a   :  { %s408_s27 = scalar_lea.vmem %s43_s10, 1024  ;;  %p413_p6 = scmp.lt.s32.totalorder %s43_s10, %s43_s10 }
  0x2b   :  { %p409_p5 = scmp.ne.s32.totalorder %s43_s10, %s408_s27  ;;  %p414_p7 = scmp.lt.s32.totalorder %s408_s27, %s408_s27 }
  0x2d   :  { %p415_p8 = por %p414_p7, %p413_p6 }
  0x2f   :  { %p416_p9 = pnand %p415_p8, %p409_p5 }
  0x31   :  { %419 = shalt.err (!%p416_p9)
}
  0x32   :  { %48 = dma.hbm_to_vmem [thread:$0]  %s549_s3, 1024, %s43_s10, [#allocation6], %s449_s28, %s449_s28, %s450_s29  }
  0x33   :  { %442 = dma.done.wait [#allocation3], 128  }
  0x34   :  { %443 = vsyncadd [#allocation3], 4294967168 }
  0x35   :  { %444 = dma.done.wait [#allocation6], 1280  }
  0x36   :  { %445 = vsyncadd [#allocation6], 4294966016  ;;  %v453_v0 = vmov 0.0   ;;  %vm454_vm0 = vmmov 0   ;;  %v336_v1 = vld [vmem:[#allocation5] sm:$0xff]   ;;  %v337_v2 = vld [vmem:[#allocation5 + $0x8] sm:$0xff]  }
  0x37   :  { %300 = vmatprep.subr.bf16.mxu0 %v453_v0  ;;  %304 = vmatprep.mubr.msk.bf16.mxu0 %vm454_vm0, %v453_v0  ;;  %v61_v3 = vld [vmem:[#allocation2] sm:$0xff]  ;;  %vm86_vm1 = vcmask 261120   ;;  %v338_v5 = vld [vmem:[#allocation7] sm:$0xff]   ;;  %v340_v7 = vld [vmem:[#allocation7 + $0x10] sm:$0xff]  }
  0x38   :  { %308 = vmatprep.subr.bf16.mxu1 %v453_v0  ;;  %324 = vmatprep.mubr.msk.bf16.mxu1 %vm454_vm0, %v453_v0  ;;  %v62_v4 = vpack.c.bf16 %v61_v3, %v61_v3  ;;  %v339_v6 = vld [vmem:[#allocation7 + $0x8] sm:$0xff]   ;;  %v341_v8 = vld [vmem:[#allocation7 + $0x18] sm:$0xff]   ;;  %v342_v9 = vld [vmem:[#allocation7 + $0x20] sm:$0xff]  }
  0x39   :  { %301 = vmatpush3.bf16.msra.mxu0 %v336_v1  ;;  %309 = vmatpush3.bf16.msra.mxu1 %v338_v5  ;;  %v343_v10 = vld [vmem:[#allocation7 + $0x28] sm:$0xff]   ;;  %v344_v11 = vld [vmem:[#allocation7 + $0x30] sm:$0xff]   ;;  %v345_v12 = vld [vmem:[#allocation7 + $0x38] sm:$0xff]  }
  0x3a   :  { %302 = vmatprep.subr.bf16.mxu0 %v453_v0  ;;  %310 = vmatprep.subr.bf16.mxu1 %v453_v0  ;;  %v273_v13 = vld [vmem:[%s548_s2] ss:$0 sm:$0xff]  ;;  %s455_s2 = smov [#allocation8]  }
  0x3b   :  { %v278_v25 = vld [vmem:[%s550_s4] ss:$0 sm:$0xff]  ;;  %s263_s7 = sshll.u32 %s455_s2, 4  ;;  %s264_s7 = int_to_ptr.vmem [resolvable:$true] %s263_s7 }
  0x3c   :  { %s420_s8 = scalar_lea.vmem %s264_s7, 128  ;;  %p425_p11 = scmp.lt.s32.totalorder %s264_s7, %s264_s7 }
  0x3d   :  { %303 = vmatpush3.bf16.msra.mxu0 %v337_v2  ;;  %311 = vmatpush3.bf16.msra.mxu1 %v339_v6  ;;  %p421_p10 = scmp.ne.s32.totalorder %s264_s7, %s420_s8  ;;  %p426_p12 = scmp.lt.s32.totalorder %s420_s8, %s420_s8 }
  0x3e   :  { %312 = vmatprep.subr.bf16.mxu1 %v453_v0 }
  0x3f   :  { %p427_p13 = por %p426_p12, %p425_p11 }
  0x40   :  { %305 = vmatmul.mubr.msk.bf16.vlgmr.msra.gmra.mrb[0].mxu0 %vm86_vm1, %v62_v4 }
  0x41   :  { %313 = vmatpush3.bf16.msra.mxu1 %v340_v7  ;;  %p428_p0 = pnand %p427_p13, %p421_p10 }
  0x42   :  { %314 = vmatprep.subr.bf16.mxu1 %v453_v0 }
  0x45   :  { %315 = vmatpush3.bf16.msra.mxu1 %v341_v8 }
  0x46   :  { %316 = vmatprep.subr.bf16.mxu1 %v453_v0 }
  0x49   :  { %317 = vmatpush3.bf16.msra.mxu1 %v342_v9 }
  0x4a   :  { %318 = vmatprep.subr.bf16.mxu1 %v453_v0 }
  0x4d   :  { %319 = vmatpush3.bf16.msra.mxu1 %v343_v10 }
  0x4e   :  { %320 = vmatprep.subr.bf16.mxu1 %v453_v0 }
  0x51   :  { %321 = vmatpush3.bf16.msra.mxu1 %v344_v11 }
  0x52   :  { %322 = vmatprep.subr.bf16.mxu1 %v453_v0 }
  0x55   :  { %323 = vmatpush3.bf16.msra.mxu1 %v345_v12 }
 0x113   :  { %v124_v14 = vpop.f32.mrb[0].mxu0 }
 0x114   :  { %v125_v15 = vadd.f32 %v273_v13, %v124_v14  ;;  %v306_v16 = vpop.f32.mrb[1].mxu0 }
 0x115   :  { %v127_v17 = vpop.f32.mrb[2].mxu0 }
 0x116   :  { %v277_v18 = vmul.f32 -1.442695, %v125_v15  ;;  %v307_v19 = vpop.f32.mrb[3].mxu0 }
 0x118   :  { %346 = vpow2.f32 %v277_v18 }
 0x122   :  { %v347_v20 = vpop.eup %346 }
 0x123   :  { %v133_v21 = vadd.f32 1.0, %v347_v20 }
 0x125   :  { %348 = vrcp.f32 %v133_v21 }
 0x12f   :  { %v349_v22 = vpop.eup %348 }
 0x130   :  { %v136_v23 = vmul.f32 %v349_v22, %v125_v15 }
 0x132   :  { %v137_v24 = vpack.c.bf16 %v136_v23, %v136_v23 }
 0x134   :  { %325 = vmatmul.mubr.bf16.vlgmr.msra.gmra.mrb[0].mxu1 %v137_v24 }
 0x207   :  { %v243_v26 = vpop.f32.mrb[0].mxu1 }
 0x208   :  { %v244_v27 = vadd.f32 %v278_v25, %v243_v26  ;;  %v326_v28 = vpop.f32.mrb[1].mxu1 }
 0x209   :  { %v246_v29 = vpop.f32.mrb[2].mxu1 }
 0x20a   :  { %v287_v30 = vmul.f32 -1.442695, %v244_v27  ;;  %v327_v31 = vpop.f32.mrb[3].mxu1 }
 0x20c   :  { %350 = vpow2.f32 %v287_v30 }
 0x216   :  { %v351_v32 = vpop.eup %350 }
 0x217   :  { %v252_v33 = vadd.f32 1.0, %v351_v32 }
 0x219   :  { %352 = vrcp.f32 %v252_v33 }
 0x223   :  { %v353_v34 = vpop.eup %352 }
 0x224   :  { %v255_v35 = vmul.f32 %v353_v34, %v244_v27 }
 0x226   :  { %256 = vst [vmem:[#allocation8] sm:$0xff] %v255_v35 }
 0x227   :  { %431 = shalt.err (!%p428_p0)
}
 0x228   :  { %s432_s10 = scalar_lea.hbm %s551_s5, 128 }
 0x229   :  { %p433_p1 = scmp.ne.s32.totalorder %s551_s5, %s432_s10  ;;  %p436_p2 = scmp.lt.u32.totalorder %s432_s10, %s551_s5 }
 0x22b   :  { %p438_p3 = pnand %p436_p2, %p433_p1 }
 0x22d   :  { %441 = shalt.err (!%p438_p3)
}
 0x22e   :  { %266 = dma.vmem_to_hbm [thread:$0]  %s264_s7, 128, %s551_s5, [#allocation4]  }
 0x22f   :  { %446 = dma.done.wait [#allocation4], 128  }
 0x230   :  { %447 = vsyncadd [#allocation4], 4294967168 }
 0x231   :  { %270 = vsyncpa [#allocation3], 1 }
 0x232   :  { %271 = vsyncpa [#allocation6], 1 }
 0x233   :  { %272 = vsyncpa [#allocation4], 1 }

</bundles_post_ra>
